<compile_context>
chip_gen: v6e
topology: v6e:2x2x1
jax: 0.10.0
libtpu: 0.0.40
codegen_flags: <defaults>
</compile_context>

<pallas_src>
import math

import jax
import jax.numpy as jnp
from jax.experimental import pallas as pl
from jax.experimental.pallas import tpu as pltpu


def _resolve_shape(total, target_shape):
    """Resolve a single -1 like torch.view and validate the element count."""
    shape = list(target_shape)
    if -1 in shape:
        idx = shape.index(-1)
        known = math.prod(int(s) for i, s in enumerate(shape) if i != idx)
        shape[idx] = total // known
    shape = tuple(int(s) for s in shape)
    assert math.prod(shape) == total, "view shape mismatch"
    return shape


def _sublane_pack(dtype):
    """Rows per packed vreg: 8 for 4-byte, 16 for bf16, 32 for int8/fp8."""
    itemsize = jnp.dtype(dtype).itemsize
    return max(8, 32 // max(itemsize, 1))


def _copy_kernel(x_ref, o_ref):
    # Straight tile copy; reshape semantics are preserved because source and
    # destination are both traversed in flat row-major order.
    o_ref[...] = x_ref[...]


def pallas_reshape(x, target_shape):
    """torch.Tensor.view equivalent. Metadata-only: no data movement."""
    return jnp.reshape(x, _resolve_shape(x.size, target_shape))


def pallas_reshape_copy(x, target_shape, *, max_lane=2048, tile_bytes=2 << 20):
    """Explicit Pallas HBM->VMEM->HBM copy that materializes x in target_shape
    order. Kept as a fusion skeleton; for a pure reshape use pallas_reshape."""
    total = int(x.size)
    shape = _resolve_shape(total, target_shape)
    dtype = x.dtype
    itemsize = jnp.dtype(dtype).itemsize
    sub = _sublane_pack(dtype)

    flat = x.reshape(-1)

    # Widest lane-dense last dim (multiple of 128, capped) dividing the total.
    lane = 0
    w = 128
    while w <= max_lane:
        if total % w == 0:
            lane = w
        w *= 2

    padded_total = total
    if lane == 0:
        # Element count is not a multiple of 128: pad only to one lane width
        # (never to a full tile), and slice the tail off afterwards.
        lane = 128
        padded_total = ((total + lane - 1) // lane) * lane
        flat = jnp.pad(flat, (0, padded_total - total))

    rows = padded_total // lane

    # dtype-aware tile rows sized so 2 buffers x (in+out) x tile stays small
    # (<= ~8 MiB total) — safe on v5e/v6e/v7x default scoped VMEM budgets.
    max_rows = max(sub, tile_bytes // (lane * itemsize))
    tile_rows = min(rows, max_rows)
    if tile_rows < rows:
        tile_rows = max((tile_rows // sub) * sub, sub)

    flat2d = flat.reshape(rows, lane)
    grid = (pl.cdiv(rows, tile_rows),)

    out2d = pl.pallas_call(
        _copy_kernel,
        out_shape=jax.ShapeDtypeStruct((rows, lane), dtype),
        grid_spec=pltpu.PrefetchScalarGridSpec(
            num_scalar_prefetch=0,
            grid=grid,
            in_specs=[pl.BlockSpec((tile_rows, lane), lambda i: (i, 0))],
            out_specs=pl.BlockSpec((tile_rows, lane), lambda i: (i, 0)),
        ),
        compiler_params=pltpu.CompilerParams(
            # "parallel" lets v7x shard the copy across both TensorCores.
            dimension_semantics=("parallel",),
            vmem_limit_bytes=32 << 20,
        ),
    )(flat2d)

    out_flat = out2d.reshape(-1)
    if padded_total != total:
        out_flat = out_flat[:total]
    return out_flat.reshape(shape)


class ReshapeModule:
    """JAX/Pallas counterpart of the PyTorch Reshape(nn.Module)."""

    def __init__(self, *args, use_pallas_copy=False):
        self.shape = args
        self.use_pallas_copy = use_pallas_copy

    def __call__(self, x):
        if self.use_pallas_copy:
            return pallas_reshape_copy(x, self.shape)
        return pallas_reshape(x, self.shape)


if __name__ == "__main__":
    key = jax.random.PRNGKey(0)
    # Small NCHW-like input: batch=2, channels=4, spatial=16x16.
    x = jax.random.normal(key, (2, 4, 16, 16), dtype=jnp.float32)
    ref = x.reshape(2, -1)

    # Primary (metadata-only) path — matches torch .view semantics for free.
    mod = ReshapeModule(2, -1)
    y = jax.block_until_ready(mod(x))
    assert y.shape == (2, 1024) and y.dtype == x.dtype
    assert bool(jnp.array_equal(y, ref))

    # Optional Pallas copy path (fusion skeleton) — exercised once on TPU.
    mod_copy = ReshapeModule(2, -1, use_pallas_copy=True)
    y2 = jax.block_until_ready(mod_copy(x))
    assert y2.shape == (2, 1024) and y2.dtype == x.dtype
    assert bool(jnp.array_equal(y2, ref))

    # Ragged element count exercises the pad-to-one-lane tail handling.
    x3 = jax.random.normal(jax.random.PRNGKey(1), (3, 5, 7), dtype=jnp.float32)
    y3 = jax.block_until_ready(pallas_reshape_copy(x3, (-1,)))
    assert bool(jnp.array_equal(y3, x3.reshape(-1)))

    print("KERNEL_OK")
</pallas_src>

<mosaic_0001>
module attributes {stable_mosaic.version = 11 : i64} {
  func.func @_copy_kernel(%arg0: i32, %arg1: memref<1x2048xf32, #tpu.memory_space<vmem>>, %arg2: memref<1x2048xf32, #tpu.memory_space<vmem>>) attributes {dimension_semantics = [#tpu.dimension_semantics<parallel>], iteration_bounds = array<i64: 1>, scalar_prefetch = 0 : i64, scratch_operands = 0 : i64, tpu.core_type = #tpu.core_type<tc>, window_params = [{transform_indices = @transform_0, window_bounds = array<i64: 1, 2048>}, {transform_indices = @transform_1, window_bounds = array<i64: 1, 2048>}]} {
    %c0 = arith.constant 0 : index
    %c0_0 = arith.constant 0 : index
    %0 = vector.load %arg1[%c0, %c0_0] : memref<1x2048xf32, #tpu.memory_space<vmem>>, vector<1x2048xf32>
    %c0_1 = arith.constant 0 : index
    %c0_2 = arith.constant 0 : index
    %1 = vector.load %arg2[%c0_1, %c0_2] : memref<1x2048xf32, #tpu.memory_space<vmem>>, vector<1x2048xf32>
    tpu.vector_store %arg2[%c0_1, %c0_2], %0 {strides = array<i32>} : memref<1x2048xf32, #tpu.memory_space<vmem>>, vector<1x2048xf32>,
    return
  }
  func.func @transform_0(%arg0: i32) -> (i32, i32) {
    %c0_i32 = arith.constant 0 : i32
    %c0_i32_0 = arith.constant 0 : i32
    return %arg0, %c0_i32 : i32, i32
  }
  func.func @transform_1(%arg0: i32) -> (i32, i32) {
    %c0_i32 = arith.constant 0 : i32
    %c0_i32_0 = arith.constant 0 : i32
    return %arg0, %c0_i32 : i32, i32
  }
}

</mosaic_0001>

<bundles_post_ra>
// kernel: tpu_custom_call.1
= control target key start
LH: loop header
LB: loop body
LE: loop exit
PB: predicated region body
PF: predicated region fallthrough
CT: control target
= control target key end

     0   :  { %6 = vsyncpa [#allocation3], 0  ;;  %s104_s0 = inlined_call_operand.hbm [shape: f32[1,2048], index: 0, kind: input, shape index: {}]   ;;  %s105_s1 = inlined_call_operand.hbm [shape: f32[1,2048], index: 1, kind: output, shape index: {}]  }
   0x1   :  { %7 = vsyncpa [#allocation4], 0  ;;  %s86_s6 = smov [#allocation2]  }
   0x2   :  { %s14_s7 = sshll.u32 %s86_s6, 4  ;;  %s15_s7 = int_to_ptr.vmem [resolvable:$true] %s14_s7 }
   0x3   :  { %s50_s8 = scalar_lea.vmem %s15_s7, 256  ;;  %p55_p1 = scmp.lt.s32.totalorder %s15_s7, %s15_s7 }
   0x4   :  { %p51_p0 = scmp.ne.s32.totalorder %s15_s7, %s50_s8  ;;  %p56_p2 = scmp.lt.s32.totalorder %s50_s8, %s50_s8 }
   0x6   :  { %p57_p3 = por %p56_p2, %p55_p1 }
   0x8   :  { %p58_p4 = pnand %p57_p3, %p51_p0 }
   0xa   :  { %61 = shalt.err (!%p58_p4)
}
   0xb   :  { %17 = dma.hbm_to_vmem [thread:$0]  %s104_s0, 256, %s15_s7, [#allocation3]  }
   0xc   :  { %82 = dma.done.wait [#allocation3], 256  }
   0xd   :  { %83 = vsyncadd [#allocation3], 4294967040  ;;  %s87_s11 = smov [#allocation5]   ;;  %v21_v0 = vld [vmem:[#allocation2] sm:$0xff]  ;;  %v22_v1 = vld [vmem:[#allocation2 + $0x8] sm:$0xff] }
   0xe   :  { %s31_s12 = sshll.u32 %s87_s11, 4  ;;  %23 = vst [vmem:[#allocation5] sm:$0xff] %v21_v0  ;;  %24 = vst [vmem:[#allocation5 + $0x8] sm:$0xff] %v22_v1  ;;  %s32_s12 = int_to_ptr.vmem [resolvable:$true] %s31_s12 }
   0xf   :  { %s62_s13 = scalar_lea.vmem %s32_s12, 256  ;;  %p67_p6 = scmp.lt.s32.totalorder %s32_s12, %s32_s12 }
  0x10   :  { %p63_p5 = scmp.ne.s32.totalorder %s32_s12, %s62_s13  ;;  %p68_p7 = scmp.lt.s32.totalorder %s62_s13, %s62_s13 }
  0x12   :  { %p69_p8 = por %p68_p7, %p67_p6 }
  0x14   :  { %p70_p9 = pnand %p69_p8, %p63_p5 }
  0x16   :  { %73 = shalt.err (!%p70_p9)
}
  0x17   :  { %34 = dma.vmem_to_hbm [thread:$0]  %s32_s12, 256, %s105_s1, [#allocation4]  }
  0x18   :  { %84 = dma.done.wait [#allocation4], 256  }
  0x19   :  { %85 = vsyncadd [#allocation4], 4294967040 }
  0x1a   :  { %38 = vsyncpa [#allocation3], 1 }
  0x1b   :  { %39 = vsyncpa [#allocation4], 1 }

</bundles_post_ra>
